<compile_context>
chip_gen: v7x
topology: tpu7x:2x2x1
jax: 0.10.0
libtpu: 0.0.40
codegen_flags: <defaults>
</compile_context>

<pallas_src>
import functools

import jax
import jax.numpy as jnp
from jax import lax
from jax.experimental import pallas as pl
from jax.experimental.pallas import tpu as pltpu


def _round_up(x, m):
    return (x + m - 1) // m * m


def conv_relu_kernel(x_ref, w_ref, b_ref, o_ref, *, wp, lane_out):
    # x_ref: (1, 1, Cin_p, LANE_IN)   bf16  one row-tile: TR+2 padded rows, flattened, +2 lane slack
    # w_ref: (3, Cout_p, 3*Cin_p)     bf16  per-dy weight slabs, contraction order (dx, ci)
    # b_ref: (Cout_p, 1)              f32
    # o_ref: (1, 1, Cout_p, LANE_OUT) f32   TR output rows at padded width Wp, flattened
    x = x_ref[0, 0]                                          # (Cin_p, LANE_IN)
    acc = jnp.zeros(o_ref.shape[2:], jnp.float32)            # (Cout_p, LANE_OUT)
    for dy in range(3):
        # dy tap = which input rows -> constant lane offset dy*Wp on the flattened axis.
        base = dy * wp
        # dx taps are 1-lane shifts; concat 3 slabs of Cin_p channels -> K = 3*Cin_p.
        patches = jnp.concatenate(
            [x[:, base + dx: base + dx + lane_out] for dx in range(3)], axis=0)
        acc = acc + jnp.dot(w_ref[dy], patches,
                            preferred_element_type=jnp.float32)
    acc = acc + b_ref[...]                                   # fused bias
    o_ref[0, 0] = jnp.maximum(acc, 0.0).astype(o_ref.dtype)  # fused ReLU


def conv_relu(x_nchw, weight_oihw, bias, *, row_tile=8):
    """Forward pass of ConvRelu (Conv2d(k=3, padding=1) + ReLU). x: (N, Cin, H, W)."""
    N, Cin, H, W = x_nchw.shape
    Cout = weight_oihw.shape[0]

    # ---- tiling / padding parameters -------------------------------------
    cin_p = _round_up(Cin, 16)           # bf16 sublane packing
    cout_p = _round_up(Cout, 8)          # f32 output sublanes
    tr = max(1, min(row_tile, H))        # output rows per grid step (sweep for prod shapes)
    h_t = _round_up(H, tr)
    t_tiles = h_t // tr
    wp = W + 2                           # 1-px width halo
    lane_out = tr * wp                   # output lane width per tile
    lane_in = (tr + 2) * wp + 2          # 2-row halo + dx slack

    # ---- wrapper-side layout plumbing (bf16 cast, pads, row-tile gather) --
    xb = x_nchw.astype(jnp.bfloat16)
    xb = jnp.pad(xb, ((0, 0), (0, cin_p - Cin), (1, 1 + h_t - H), (1, 1)))
    # xb: (N, Cin_p, h_t + 2, Wp). Gather overlapping row windows per tile.
    row_idx = (jnp.arange(t_tiles)[:, None] * tr
               + jnp.arange(tr + 2)[None, :]).reshape(-1)
    x_tiles = jnp.take(xb, row_idx, axis=2)                        # (N, Cin_p, T*(tr+2), Wp)
    x_tiles = x_tiles.reshape(N, cin_p, t_tiles, tr + 2, wp)
    x_tiles = jnp.transpose(x_tiles, (0, 2, 1, 3, 4))              # (N, T, Cin_p, tr+2, Wp)
    x_tiles = x_tiles.reshape(N, t_tiles, cin_p, (tr + 2) * wp)
    x_tiles = jnp.pad(
        x_tiles, ((0, 0), (0, 0), (0, 0), (0, lane_in - (tr + 2) * wp)))

    wb = weight_oihw.astype(jnp.bfloat16)
    wb = jnp.pad(wb, ((0, cout_p - Cout), (0, cin_p - Cin), (0, 0), (0, 0)))
    # (co, ci, dy, dx) -> (dy, co, dx, ci) -> (3, Cout_p, 3*Cin_p); matches the patch concat.
    w3 = jnp.transpose(wb, (2, 0, 3, 1)).reshape(3, cout_p, 3 * cin_p)

    b2d = jnp.pad(bias.astype(jnp.float32), (0, cout_p - Cout)).reshape(cout_p, 1)

    # ---- VMEM budget from tile arithmetic (2x for double buffering) -------
    x_blk = cin_p * lane_in * 2
    o_blk = cout_p * lane_out * 4
    w_blk = 3 * cout_p * 3 * cin_p * 2
    scratch = 3 * cin_p * lane_out * 2 + cout_p * lane_out * 4
    vmem_limit = int(min(100 * 1024 * 1024,
                         max(32 * 1024 * 1024,
                             2 * (x_blk + o_blk) + w_blk + scratch + (4 << 20))))

    flops = 2 * N * t_tiles * lane_out * cout_p * 9 * cin_p
    bytes_accessed = int(x_tiles.size * 2 + w3.size * 2 + b2d.size * 4
                         + N * t_tiles * o_blk)

    out_tiles = pl.pallas_call(
        functools.partial(conv_relu_kernel, wp=wp, lane_out=lane_out),
        out_shape=jax.ShapeDtypeStruct((N, t_tiles, cout_p, lane_out), jnp.float32),
        grid_spec=pltpu.PrefetchScalarGridSpec(
            num_scalar_prefetch=0,
            grid=(N, t_tiles),
            in_specs=[
                pl.BlockSpec((1, 1, cin_p, lane_in), lambda n, t: (n, t, 0, 0)),
                pl.BlockSpec((3, cout_p, 3 * cin_p), lambda n, t: (0, 0, 0)),
                pl.BlockSpec((cout_p, 1), lambda n, t: (0, 0)),
            ],
            out_specs=pl.BlockSpec((1, 1, cout_p, lane_out),
                                   lambda n, t: (n, t, 0, 0)),
        ),
        compiler_params=pltpu.CompilerParams(
            dimension_semantics=("parallel", "parallel"),
            vmem_limit_bytes=vmem_limit),
        cost_estimate=pl.CostEstimate(flops=flops, transcendentals=0,
                                      bytes_accessed=bytes_accessed),
    )(x_tiles, w3, b2d)

    # (N, T, Cout_p, TR*Wp) -> (N, Cout_p, H_t, Wp) -> crop channel/row/col padding -> NCHW.
    out = out_tiles.reshape(N, t_tiles, cout_p, tr, wp)
    out = jnp.transpose(out, (0, 2, 1, 3, 4)).reshape(N, cout_p, h_t, wp)
    return out[:, :Cout, :H, :W]


if __name__ == "__main__":
    key = jax.random.PRNGKey(0)
    k_x, k_w, k_b = jax.random.split(key, 3)

    N, Cin, Cout, H, W = 2, 4, 8, 16, 16

    x = jax.random.normal(k_x, (N, Cin, H, W), dtype=jnp.float32)
    weight = 0.1 * jax.random.normal(k_w, (Cout, Cin, 3, 3), dtype=jnp.float32)
    bias = 0.1 * jax.random.normal(k_b, (Cout,), dtype=jnp.float32)

    out = conv_relu(x, weight, bias)
    out = jax.block_until_ready(out)

    # Reference: f32 conv + bias + ReLU (kernel uses bf16 operands, f32 accumulation).
    ref = lax.conv_general_dilated(
        x, weight, window_strides=(1, 1), padding=((1, 1), (1, 1)),
        dimension_numbers=("NCHW", "OIHW", "NCHW"))
    ref = jnp.maximum(ref + bias[None, :, None, None], 0.0)

    assert out.shape == (N, Cout, H, W)
    assert jnp.allclose(out, ref, atol=3e-2, rtol=3e-2), float(
        jnp.max(jnp.abs(out - ref)))

    print("KERNEL_OK")
</pallas_src>

<mosaic_0001>
module attributes {stable_mosaic.version = 11 : i64} {
  func.func @conv_relu_kernel(%arg0: i32, %arg1: i32, %arg2: memref<1x1x16x182xbf16, #tpu.memory_space<vmem>>, %arg3: memref<3x8x48xbf16, #tpu.memory_space<vmem>>, %arg4: memref<8x1xf32, #tpu.memory_space<vmem>>, %arg5: memref<1x1x8x144xf32, #tpu.memory_space<vmem>>) attributes {dimension_semantics = [#tpu.dimension_semantics<parallel>, #tpu.dimension_semantics<parallel>], iteration_bounds = array<i64: 2, 2>, scalar_prefetch = 0 : i64, scratch_operands = 0 : i64, tpu.core_type = #tpu.core_type<tc>, window_params = [{transform_indices = @transform_0, window_bounds = array<i64: 1, 1, 16, 182>}, {pipeline_mode = #tpu.pipeline_mode<synchronous>, transform_indices = @transform_1, window_bounds = array<i64: 3, 8, 48>}, {pipeline_mode = #tpu.pipeline_mode<synchronous>, transform_indices = @transform_2, window_bounds = array<i64: 8, 1>}, {transform_indices = @transform_3, window_bounds = array<i64: 1, 1, 8, 144>}]} {
    %c0 = arith.constant 0 : index
    %c0_0 = arith.constant 0 : index
    %c0_1 = arith.constant 0 : index
    %c0_2 = arith.constant 0 : index
    %0 = vector.load %arg2[%c0, %c0_0, %c0_1, %c0_2] : memref<1x1x16x182xbf16, #tpu.memory_space<vmem>>, vector<1x1x16x182xbf16>
    %1 = vector.shape_cast %0 : vector<1x1x16x182xbf16> to vector<16x182xbf16>
    %cst = arith.constant 0.000000e+00 : f32
    %2 = vector.broadcast %cst : f32 to vector<8x144xf32>
    %3 = vector.extract_strided_slice %1 {offsets = [0, 0], sizes = [16, 144], strides = [1, 1]} : vector<16x182xbf16> to vector<16x144xbf16>
    %4 = vector.extract_strided_slice %1 {offsets = [0, 1], sizes = [16, 144], strides = [1, 1]} : vector<16x182xbf16> to vector<16x144xbf16>
    %5 = vector.extract_strided_slice %1 {offsets = [0, 2], sizes = [16, 144], strides = [1, 1]} : vector<16x182xbf16> to vector<16x144xbf16>
    %6 = tpu.concatenate %3, %4, %5 in 0 : vector<16x144xbf16>, vector<16x144xbf16>, vector<16x144xbf16> -> vector<48x144xbf16>
    %c0_3 = arith.constant 0 : index
    %c0_4 = arith.constant 0 : index
    %c0_5 = arith.constant 0 : index
    %7 = vector.load %arg3[%c0_3, %c0_4, %c0_5] : memref<3x8x48xbf16, #tpu.memory_space<vmem>>, vector<1x8x48xbf16>
    %8 = vector.shape_cast %7 : vector<1x8x48xbf16> to vector<8x48xbf16>
    %cst_6 = arith.constant dense<0.000000e+00> : vector<8x144xf32>
    %9 = tpu.matmul %8, %6, %cst_6 {dimension_numbers = #tpu.dot_dimension_numbers<[1], [0], [0], [1], [0, 0, 1, 1], [], []>} : vector<8x48xbf16>, vector<48x144xbf16>, vector<8x144xf32> -> vector<8x144xf32>
    %10 = arith.addf %2, %9 : vector<8x144xf32>
    %11 = vector.extract_strided_slice %1 {offsets = [0, 18], sizes = [16, 144], strides = [1, 1]} : vector<16x182xbf16> to vector<16x144xbf16>
    %12 = vector.extract_strided_slice %1 {offsets = [0, 19], sizes = [16, 144], strides = [1, 1]} : vector<16x182xbf16> to vector<16x144xbf16>
    %13 = vector.extract_strided_slice %1 {offsets = [0, 20], sizes = [16, 144], strides = [1, 1]} : vector<16x182xbf16> to vector<16x144xbf16>
    %14 = tpu.concatenate %11, %12, %13 in 0 : vector<16x144xbf16>, vector<16x144xbf16>, vector<16x144xbf16> -> vector<48x144xbf16>
    %c1 = arith.constant 1 : index
    %c0_7 = arith.constant 0 : index
    %c0_8 = arith.constant 0 : index
    %15 = vector.load %arg3[%c1, %c0_7, %c0_8] : memref<3x8x48xbf16, #tpu.memory_space<vmem>>, vector<1x8x48xbf16>
    %16 = vector.shape_cast %15 : vector<1x8x48xbf16> to vector<8x48xbf16>
    %cst_9 = arith.constant dense<0.000000e+00> : vector<8x144xf32>
    %17 = tpu.matmul %16, %14, %cst_9 {dimension_numbers = #tpu.dot_dimension_numbers<[1], [0], [0], [1], [0, 0, 1, 1], [], []>} : vector<8x48xbf16>, vector<48x144xbf16>, vector<8x144xf32> -> vector<8x144xf32>
    %18 = arith.addf %10, %17 : vector<8x144xf32>
    %19 = vector.extract_strided_slice %1 {offsets = [0, 36], sizes = [16, 144], strides = [1, 1]} : vector<16x182xbf16> to vector<16x144xbf16>
    %20 = vector.extract_strided_slice %1 {offsets = [0, 37], sizes = [16, 144], strides = [1, 1]} : vector<16x182xbf16> to vector<16x144xbf16>
    %21 = vector.extract_strided_slice %1 {offsets = [0, 38], sizes = [16, 144], strides = [1, 1]} : vector<16x182xbf16> to vector<16x144xbf16>
    %22 = tpu.concatenate %19, %20, %21 in 0 : vector<16x144xbf16>, vector<16x144xbf16>, vector<16x144xbf16> -> vector<48x144xbf16>
    %c2 = arith.constant 2 : index
    %c0_10 = arith.constant 0 : index
    %c0_11 = arith.constant 0 : index
    %23 = vector.load %arg3[%c2, %c0_10, %c0_11] : memref<3x8x48xbf16, #tpu.memory_space<vmem>>, vector<1x8x48xbf16>
    %24 = vector.shape_cast %23 : vector<1x8x48xbf16> to vector<8x48xbf16>
    %cst_12 = arith.constant dense<0.000000e+00> : vector<8x144xf32>
    %25 = tpu.matmul %24, %22, %cst_12 {dimension_numbers = #tpu.dot_dimension_numbers<[1], [0], [0], [1], [0, 0, 1, 1], [], []>} : vector<8x48xbf16>, vector<48x144xbf16>, vector<8x144xf32> -> vector<8x144xf32>
    %26 = arith.addf %18, %25 : vector<8x144xf32>
    %c0_13 = arith.constant 0 : index
    %c0_14 = arith.constant 0 : index
    %27 = vector.load %arg4[%c0_13, %c0_14] : memref<8x1xf32, #tpu.memory_space<vmem>>, vector<8x1xf32>
    %28 = vector.broadcast %27 : vector<8x1xf32> to vector<8x144xf32>
    %29 = arith.addf %26, %28 : vector<8x144xf32>
    %cst_15 = arith.constant 0.000000e+00 : f32
    %30 = vector.broadcast %cst_15 : f32 to vector<8x144xf32>
    %31 = arith.maximumf %29, %30 : vector<8x144xf32>
    %c0_16 = arith.constant 0 : index
    %c0_17 = arith.constant 0 : index
    %c0_18 = arith.constant 0 : index
    %c0_19 = arith.constant 0 : index
    %32 = vector.load %arg5[%c0_16, %c0_17, %c0_18, %c0_19] : memref<1x1x8x144xf32, #tpu.memory_space<vmem>>, vector<1x1x8x144xf32>
    %33 = vector.shape_cast %32 : vector<1x1x8x144xf32> to vector<8x144xf32>
    %34 = vector.shape_cast %31 : vector<8x144xf32> to vector<1x1x8x144xf32>
    tpu.vector_store %arg5[%c0_16, %c0_17, %c0_18, %c0_19], %34 {strides = array<i32>} : memref<1x1x8x144xf32, #tpu.memory_space<vmem>>, vector<1x1x8x144xf32>,
    return
  }
  func.func @transform_0(%arg0: i32, %arg1: i32) -> (i32, i32, i32, i32) {
    %c0_i32 = arith.constant 0 : i32
    %c0_i32_0 = arith.constant 0 : i32
    %c0_i32_1 = arith.constant 0 : i32
    return %arg0, %arg1, %c0_i32, %c0_i32_0 : i32, i32, i32, i32
  }
  func.func @transform_1(%arg0: i32, %arg1: i32) -> (i32, i32, i32) {
    %c0_i32 = arith.constant 0 : i32
    %c0_i32_0 = arith.constant 0 : i32
    %c0_i32_1 = arith.constant 0 : i32
    %c0_i32_2 = arith.constant 0 : i32
    return %c0_i32, %c0_i32_0, %c0_i32_1 : i32, i32, i32
  }
  func.func @transform_2(%arg0: i32, %arg1: i32) -> (i32, i32) {
    %c0_i32 = arith.constant 0 : i32
    %c0_i32_0 = arith.constant 0 : i32
    %c0_i32_1 = arith.constant 0 : i32
    return %c0_i32, %c0_i32_0 : i32, i32
  }
  func.func @transform_3(%arg0: i32, %arg1: i32) -> (i32, i32, i32, i32) {
    %c0_i32 = arith.constant 0 : i32
    %c0_i32_0 = arith.constant 0 : i32
    %c0_i32_1 = arith.constant 0 : i32
    return %arg0, %arg1, %c0_i32, %c0_i32_0 : i32, i32, i32, i32
  }
}

</mosaic_0001>

<bundles_post_ra>
// kernel: tpu_custom_call.1
= control target key start
LH: loop header
LB: loop body
LE: loop exit
PB: predicated region body
PF: predicated region fallthrough
CT: control target
= control target key end

     0   :  { %8 = vsyncpa [#allocation3], 0  ;;  %s1027_s0 = inlined_call_operand.hbm [shape: bf16[2,2,16,182], index: 0, kind: input, shape index: {}]   ;;  %s1028_s1 = inlined_call_operand.vmem [shape: bf16[3,8,48], index: 1, kind: input, shape index: {}]   ;;  %s1029_s2 = inlined_call_operand.vmem [shape: f32[8,1], index: 2, kind: input, shape index: {}]   ;;  %s1030_s3 = inlined_call_operand.hbm [shape: f32[2,2,8,144], index: 3, kind: output, shape index: {}]  }
   0x1   :  { %10 = vsyncpa [#allocation3 + $0x1], 0 }
   0x2   :  { %11 = vsyncpa [#allocation4], 0 }
   0x3   :  { %13 = vsyncpa [#allocation4 + $0x1], 0  ;;  %s809_s12 = smov 0   ;;  %s811_s13 = smov 0  }
   0x4   :  { %s813_s14 = smov 0   ;;  %s815_s15 = smov 0  }
   0x5   :  { %s817_s16 = smov 0   ;;  %s819_s17 = smov 0  }
   0x6   :  { %s821_s18 = smov 0   ;;  %s823_s19 = smov 0  }
   0x7 LB: > { %s537_s20 = sadd.s32 4294967295, %s778_s19   ;;  %s538_s21 = sadd.s32 4294967294, %s778_s19   ;;  %s778_s19 = sphi %s823_s19, %s19_s19   ;;  %s774_s18 = sphi %s821_s18, %s1048_s18   ;;  %s770_s17 = sphi %s819_s17, %s1047_s17   ;;  %s766_s16 = sphi %s817_s16, %s1046_s16   ;;  %s762_s15 = sphi %s815_s15, %s1045_s15   ;;  %s758_s14 = sphi %s813_s14, %s1044_s14   ;;  %s754_s13 = sphi %s811_s13, %s1043_s13   ;;  %s750_s12 = sphi %s809_s12, %s1042_s12  }
   0x8   : > { %s28_s22 = sadd.s32 1, %s770_s17  ;;  %s31_s23 = sadd.s32 1, %s774_s18 }
   0x9   : > { %p29_p0 = scmp.ge.s32.totalorder %s28_s22, 2  ;;  %s40_s24 = sadd.s32 1, %s758_s14 }
   0xa   : > { %p47_p1 = scmp.ne.s32.totalorder %s758_s14, %s754_s13  ;;  %p48_p2 = scmp.eq.s32.totalorder %s778_s19, 0 }
   0xb   : > { %s1050_s22 = smov (%p29_p0, %s28_s22), 0  ;;  %s1052_s23 = smov (!%p29_p0, %s31_s23), %s774_s18 }
   0xc   : > { %s36_s25 = ssub.s32 %s770_s17, %s1050_s22  ;;  %p862_p3 = por %p48_p2, %p47_p1 }
   0xd   : > { %p33_p4 = scmp.ge.s32.totalorder %s1052_s23, 2  ;;  %p53_p5 = scmp.ne.s32.totalorder %s754_s13, %s750_s12 }
   0xe   : > { %p54_p6 = scmp.eq.s32.totalorder %s537_s20, 0  ;;  %p121_p7 = scmp.eq.s32.totalorder %s537_s20, 3 }
   0xf   : > { %s1054_s23 = smov (%p33_p4, %s1052_s23), 0  ;;  %p127_p10 = scmp.eq.s32.totalorder %s538_s21, 3 }
  0x10   : > { %1034 = sst [smem:[#allocation8_spill]] %s1054_s23  ;;  %p870_p8 = por %p54_p6, %p53_p5 }
  0x11   : > { %p874_p9 = por %p121_p7, %p47_p1  ;;  %s35_s29 = ssub.s32 %s774_s18, %s1054_s23 }
  0x12   : > { %s37_s30 = sor.u32 %s36_s25, %s35_s29  ;;  %p880_p12 = por %p127_p10, %p53_p5 }
  0x13   : > { %s1036_s28 = scalar_select %p874_p9, 1, 0 }
  0x14   : > { %p38_p11 = scmp.eq.s32.totalorder %s37_s30, 0  ;;  %p573_p13 = scmp.lt.s32.totalorder %s778_s19, 4 }
  0x15   : > { %s1037_s4 = scalar_select %p880_p12, 1, 0 }
  0x16   : > { %s153_s5 = sand.u32 1, %s758_s14   ;;  %s542_s8 = sshll.u32 %s770_s17, 2 }
  0x17   : > { %s887_s6 = scalar_select %p38_p11, %s758_s14, %s40_s24  }
  0x18   : > { %s541_s7 = sshll.u32 %s153_s5, 4  ;;  %s543_s9 = sshll.u32 %s774_s18, 3 }
  0x19   : > { %s157_s10 = scalar_lea.vmem [#allocation2], %s541_s7  ;;  %s163_s20 = sadd.s32 %s543_s9, %s542_s8 }
  0x1a   : > { %s166_s11 = sshll.u32 %s157_s10, 4  ;;  %s544_s23 = sshll.u32 %s163_s20, 6  ;;  %s891_s11 = int_to_ptr.vmem [resolvable:$true] %s166_s11 }
  0x1b   : > { %p895_p0 = pnand %p573_p13, %p862_p3  ;;  %s902_s24 = scalar_lea.hbm %s1027_s0, %s544_s23 }
  0x1c   : > { %s904_s30 = scalar_lea.sflag [#allocation3], %s153_s5  ;;  %s650_s7 = scalar_lea.hbm %s902_s24, 256 }
  0x1d   : > { %p651_p1 = scmp.ne.s32.totalorder %s902_s24, %s650_s7  ;;  %p652_p2 = pneg %p895_p0 }
  0x1e   : > { %s655_s9 = scalar_lea.hbm %s1027_s0, 1024  ;;  %p656_p5 = scmp.lt.u32.totalorder %s902_s24, %s1027_s0 }
  0x1f   : > { %p653_p3 = pnand %p652_p2, %p651_p1  ;;  %p657_p6 = scmp.lt.u32.totalorder %s655_s9, %s650_s7 }
  0x20   : > { %p659_p10 = scmp.lt.u32.totalorder %s650_s7, %s902_s24 }
  0x21   : > { %p654_p4 = pneg %p653_p3  ;;  %p658_p7 = por %p657_p6, %p656_p5 }
  0x23   : > { %p660_p11 = por %p659_p10, %p658_p7 }
  0x25   : > { %p661_p13 = pnand %p660_p11, %p654_p4 }
  0x27   : > { %664 = shalt.err (!%p661_p13)
}
  0x28   : > { %s665_s5 = scalar_lea.vmem %s891_s11, 256  ;;  %s780_s20 = smov [#allocation2]  }
  0x29   : > { %p666_p1 = scmp.ne.s32.totalorder %s891_s11, %s665_s5  ;;  %s670_s25 = sshll.u32 %s780_s20, 4  ;;  %s671_s25 = int_to_ptr.vmem [resolvable:$false] %s670_s25 }
  0x2a   : > { %s672_s29 = scalar_lea.vmem %s671_s25, 512  ;;  %p673_p9 = scmp.lt.s32.totalorder %s891_s11, %s671_s25 }
  0x2b   : > { %p668_p3 = pnand %p666_p1, %p652_p2  ;;  %p674_p5 = scmp.lt.s32.totalorder %s672_s29, %s665_s5 }
  0x2d   : > { %p669_p12 = pneg %p668_p3  ;;  %p675_p6 = por %p674_p5, %p673_p9 }
  0x2f   : > { %p676_p7 = pnand %p675_p6, %p669_p12 }
  0x31   : > { %679 = shalt.err (!%p676_p7)
}
  0x32   : > { %s781_s7 = smov 128   ;;  %s782_s26 = smov 8  }
  0x33   : > { %568 = dma.hbm_to_vmem [thread:$0]  (!%p895_p0), %s902_s24, 256, %s891_s11, %s904_s30, %s781_s7, %s781_s7, %s782_s26  }
  0x34   : > { %p545_p2 = scmp.ge.s32.totalorder %s778_s19, 1  ;;  %p174_p4 = scmp.lt.s32.totalorder %s778_s19, 5 }
  0x36   : > { %p175_p10 = pnand %p545_p2, %p174_p4 }
  0x37   : > { %s935_s8 = sand.u32 (!%p175_p10), 1, %s754_s13  }
  0x38   : > { %178 = sbr.rel (%p175_p10) target bundleno = 554 (0x22a), region = 32  ;;  %s546_s9 = sshll.u32 (!%p175_p10), %s935_s8, 4 }
  0x39   : > { %s181_s23 = scalar_lea.sflag (!%p175_p10), [#allocation3], %s935_s8  ;;  %s184_s10 = scalar_lea.vmem (!%p175_p10), [#allocation2], %s546_s9 }
  0x3f   : > { %741 = dma.done.wait (%p870_p8), %s181_s23, 256  }
  0x40   : > { %743 = vsyncadd (%p870_p8), %s181_s23, 4294967040  ;;  %v647_v0 = vld [vmem:[%s184_s10] ss:$8 sps:$4 sm:$0xff]   ;;  %v649_v1 = vld [vmem:[%s184_s10 + $0x4] ss:$8 sps:$4 sm:$0xff]   ;;  %s783_s11 = smov 126  }
  0x41   : > { %228 = vrot.lane.b32.xlu1 %v647_v0, %s783_s11  ;;  %s784_s21 = smov 127   ;;  %309 = vmatprep.subr.bf16.mxu1 %v649_v1  ;;  %s785_s24 = smov 110   ;;  %v786_v4 = vmov 0   ;;  %vm224_vm0 = vcmask 1039360   ;;  %vm232_vm1 = vcmask 1031168   ;;  %vm251_vm2 = vcmask 900096  }
  0x42   : > { %220 = vrot.lane.b32.xlu0 %v647_v0, %s784_s21  ;;  %310 = vmatpush1.bf16.msra.mxu1 %v647_v0  ;;  %vm261_vm3 = vcmask 392192   ;;  %v236_v12 = vld [vmem:[%s1028_s1] sm:$0xf]  ;;  %s787_s5 = smov 92   ;;  %vm364_vm4 = vcmask 752640   ;;  %s556_s10 = sshll.u32 %s762_s15, 1 }
  0x43   : > { %297 = vmatprep.mubr.bf16.mxu0 %v786_v4  ;;  %341 = vmatprep.mubr.bf16.mxu1 %v786_v4  ;;  %v420_v13 = vld [vmem:[%s1029_s2] sm:$0xff]  ;;  %v553_v30 = vld [vmem:[%s1028_s1 + $0x8] sm:$0xf]  ;;  %s206_s27 = scalar_lea.vmem [#allocation5], %s546_s9  ;;  %vm431_vm5 = vcmask 130048   ;;  %s434_s20 = scalar_lea.sflag [#allocation4], %s935_s8 }
  0x44   : > { %646 = vset.pattern.permute.xlu0 %v786_v4  ;;  %v550_v20 = vld [vmem:[%s1028_s1 + $0x4] sm:$0xf]  ;;  %s450_s30 = sshll.u32 %s206_s27, 4  ;;  %p1039_p9 = scmp.ne.s32.totalorder %s1036_s28, 0  ;;  %s975_s30 = int_to_ptr.vmem [resolvable:$true] %s450_s30 }
  0x45   : > { %230 = vrot.lane.b32.xlu1 %v649_v1, %s783_s11  ;;  %s557_s11 = sshll.u32 %s766_s16, 2  ;;  %s680_s25 = scalar_lea.vmem %s975_s30, 256 }
  0x46   : > { %222 = vrot.lane.b32.xlu0 %v649_v1, %s784_s21  ;;  %s446_s21 = sadd.s32 %s557_s11, %s556_s10  ;;  %p681_p8 = scmp.ne.s32.totalorder %s975_s30, %s680_s25 }
  0x47   : > { %s788_s9 = smov [#allocation5]  }
  0x48   : > { %p682_p12 = pnand %p681_p8, %p1039_p9  ;;  %s684_s29 = sshll.u32 %s788_s9, 4  ;;  %s685_s29 = int_to_ptr.vmem [resolvable:$false] %s684_s29 }
  0x49   : > { %241 = vrot.lane.b32.xlu1 %v649_v1, %s785_s24  ;;  %s686_s7 = scalar_lea.vmem %s685_s29, 512  ;;  %p687_p11 = scmp.lt.s32.totalorder %s975_s30, %s685_s29 }
  0x4a   : > { %239 = vrot.lane.b32.xlu0 %v647_v0, %s785_s24  ;;  %p683_p0 = pneg %p682_p12  ;;  %p688_p13 = scmp.lt.s32.totalorder %s686_s7, %s680_s25 }
  0x4c   : > { %p689_p1 = por %p688_p13, %p687_p11 }
  0x4e   : > { %p690_p3 = pnand %p689_p1, %p683_p0 }
  0xb3   : > { %v229_v2 = vpop.permute.xlu1 %228 }
  0xb4   : > { %v221_v3 = vpop.permute.xlu0 %220 }
  0xb7   : > { %v231_v5 = vpop.permute.xlu1 %230 }
  0xb8   : > { %v223_v6 = vpop.permute.xlu0 %222  ;;  %v233_v10 = vsel %vm232_vm1, %v229_v2, %v231_v5 }
  0xb9   : > { %245 = vrot.lane.b32.xlu1 %v223_v6, %s785_s24  ;;  %311 = vmatprep.subr.bf16.mxu1 %v223_v6  ;;  %v225_v7 = vsel %vm224_vm0, %v221_v3, %v223_v6 }
  0xba   : > { %243 = vrot.lane.b32.xlu0 %v225_v7, %s785_s24  ;;  %312 = vmatpush1.bf16.msra.mxu1 %v225_v7 }
  0xbb   : > { %313 = vmatprep.subr.bf16.mxu1 %v231_v5  ;;  %v242_v8 = vpop.permute.xlu1 %241 }
  0xbc   : > { %v240_v9 = vpop.permute.xlu0 %239  ;;  %265 = vmatprep.subr.bf16.mxu0 %v242_v8 }
  0xbd   : > { %249 = vrot.lane.b32.xlu1 %v231_v5, %s785_s24  ;;  %v252_v11 = vsel %vm251_vm2, %v240_v9, %v242_v8 }
  0xbe   : > { %247 = vrot.lane.b32.xlu0 %v233_v10, %s785_s24  ;;  %314 = vmatpush1.bf16.msra.mxu1 %v233_v10  ;;  %s558_s24 = sshll.u32 %s446_s21, 7 }
  0xbf   : > { %266 = vmatpush1.bf16.msra.mxu0 %v252_v11 }
  0xc1   : > { %354 = vrot.lane.b32.xlu1 %v649_v1, %s787_s5  ;;  %552 = vmatmul.mubr.msk.bf16.vlgmr.msra.gmra.mrb[0].mxu1 %vm261_vm3, %v236_v12 }
  0xc2   : > { %352 = vrot.lane.b32.xlu0 %v647_v0, %s787_s5 }
  0xc5   : > { %358 = vrot.lane.b32.xlu1 %v223_v6, %s787_s5 }
  0xc6   : > { %356 = vrot.lane.b32.xlu0 %v225_v7, %s787_s5 }
  0xc9   : > { %362 = vrot.lane.b32.xlu1 %v231_v5, %s787_s5 }
  0xca   : > { %360 = vrot.lane.b32.xlu0 %v233_v10, %s787_s5  ;;  %s973_s5 = scalar_lea.hbm %s1030_s3, %s558_s24 }
  0xce   : > { %423 = vperm.xlu0 %646, %v420_v13  }
 0x12b   : > { %v246_v14 = vpop.permute.xlu1 %245 }
 0x12c   : > { %267 = vmatprep.subr.bf16.mxu0 %v246_v14  ;;  %v244_v15 = vpop.permute.xlu0 %243 }
 0x12d   : > { %v253_v16 = vsel %vm251_vm2, %v244_v15, %v246_v14 }
 0x12e   : > { %268 = vmatpush1.bf16.msra.mxu0 %v253_v16 }
 0x12f   : > { %v250_v17 = vpop.permute.xlu1 %249 }
 0x130   : > { %269 = vmatprep.subr.bf16.mxu0 %v250_v17  ;;  %v248_v18 = vpop.permute.xlu0 %247 }
 0x131   : > { %v254_v19 = vsel %vm251_vm2, %v248_v18, %v250_v17 }
 0x132   : > { %270 = vmatpush1.bf16.msra.mxu0 %v254_v19 }
 0x133   : > { %v355_v21 = vpop.permute.xlu1 %354 }
 0x134   : > { %v353_v22 = vpop.permute.xlu0 %352  ;;  %377 = vmatprep.subr.bf16.mxu0 %v355_v21 }
 0x135   : > { %v365_v23 = vsel %vm364_vm4, %v353_v22, %v355_v21  ;;  %551 = vmatmul.mubr.msk.bf16.vlgmr.msra.gmra.mrb[0].mxu0 %vm261_vm3, %v550_v20 }
 0x136   : > { %378 = vmatpush1.bf16.msra.mxu0 %v365_v23  ;;  %409 = vmatprep.mubr.bf16.mxu0 %v786_v4 }
 0x137   : > { %v359_v24 = vpop.permute.xlu1 %358 }
 0x138   : > { %379 = vmatprep.subr.bf16.mxu0 %v359_v24  ;;  %v357_v25 = vpop.permute.xlu0 %356 }
 0x139   : > { %v366_v26 = vsel %vm364_vm4, %v357_v25, %v359_v24 }
 0x13a   : > { %380 = vmatpush1.bf16.msra.mxu0 %v366_v26 }
 0x13b   : > { %v363_v27 = vpop.permute.xlu1 %362 }
 0x13c   : > { %381 = vmatprep.subr.bf16.mxu0 %v363_v27  ;;  %v361_v28 = vpop.permute.xlu0 %360 }
 0x13d   : > { %v367_v29 = vsel %vm364_vm4, %v361_v28, %v363_v27 }
 0x13e   : > { %382 = vmatpush1.bf16.msra.mxu0 %v367_v29 }
 0x141   : > { %554 = vmatmul.mubr.msk.bf16.vlgmr.msra.gmra.mrb[4].mxu0 %vm261_vm3, %v553_v30 }
 0x14d   : > { %v424_v42 = vpop.permute.xlu0 %423 }
 0x194   : > { %v343_v31 = vpop.f32.mrb[0].mxu1 }
 0x195   : > { %v345_v32 = vpop.f32.mrb[1].mxu1 }
 0x196   : > { %v347_v33 = vpop.f32.mrb[2].mxu1 }
 0x197   : > { %v348_v34 = vpop.f32.mrb[3].mxu1 }
 0x208   : > { %v299_v35 = vpop.f32.mrb[0].mxu0 }
 0x209   : > { %v344_v36 = vadd.f32 %v343_v31, %v299_v35  ;;  %v301_v37 = vpop.f32.mrb[1].mxu0 }
 0x20a   : > { %v346_v38 = vadd.f32 %v345_v32, %v301_v37  ;;  %v303_v39 = vpop.f32.mrb[2].mxu0 }
 0x20b   : > { %v304_v40 = vpop.f32.mrb[3].mxu0 }
 0x214   : > { %v411_v41 = vpop.f32.mrb[4].mxu0 }
 0x215   : > { %v418_v43 = vadd.f32 %v411_v41, %v344_v36  ;;  %v413_v44 = vpop.f32.mrb[5].mxu0 }
 0x216   : > { %v419_v45 = vadd.f32 %v413_v44, %v346_v38  ;;  %v415_v46 = vpop.f32.mrb[6].mxu0 }
 0x217   : > { %v426_v47 = vadd.f32 %v424_v42, %v418_v43  ;;  %v416_v48 = vpop.f32.mrb[7].mxu0 }
 0x218   : > { %v427_v49 = vadd.f32 %v424_v42, %v419_v45 }
 0x219   : > { %v428_v50 = vmax.f32 %v426_v47, 0.0 }
 0x21a   : > { %v429_v51 = vmax.f32 %v427_v49, 0.0 }
 0x21b   : > { %430 = vst [vmem:[%s206_s27] sm:$0xff] %v428_v50 }
 0x21c   : > { %432 = vst.msk [vmem:[%s206_s27 + $0x8] sm:$0xff] %vm431_vm5, %v429_v51 }
 0x21d   : > { %693 = shalt.err (!%p690_p3)
}
 0x21e   : > { %s694_s8 = scalar_lea.hbm %s973_s5, 256  ;;  %s698_s10 = scalar_lea.hbm %s1030_s3, 1024 }
 0x21f   : > { %p695_p5 = scmp.ne.s32.totalorder %s973_s5, %s694_s8  ;;  %p699_p2 = scmp.lt.u32.totalorder %s973_s5, %s1030_s3 }
 0x220   : > { %p700_p4 = scmp.lt.u32.totalorder %s698_s10, %s694_s8  ;;  %p702_p8 = scmp.lt.u32.totalorder %s694_s8, %s973_s5 }
 0x221   : > { %p696_p6 = pnand %p695_p5, %p1039_p9 }
 0x222   : > { %p701_p10 = por %p700_p4, %p699_p2 }
 0x223   : > { %p697_p7 = pneg %p696_p6 }
 0x224   : > { %p703_p12 = por %p702_p8, %p701_p10 }
 0x226   : > { %p704_p0 = pnand %p703_p12, %p697_p7 }
 0x228   : > { %707 = shalt.err (!%p704_p0)
}
 0x229   : > { %563 = dma.vmem_to_hbm [thread:$0]  (%p1039_p9), %s975_s30, 256, %s973_s5, %s434_s20  }
 0x22a PF: > { %p574_p11 = scmp.ge.s32.totalorder %s778_s19, 2  ;;  %s462_s24 = sand.u32 1, %s750_s12  }
 0x22b   : > { %p1040_p13 = scmp.ne.s32.totalorder %s1037_s4, 0  ;;  %s463_s27 = scalar_lea.sflag [#allocation4], %s462_s24 }
 0x22d   : > { %p570_p1 = pnand %p574_p11, %p1040_p13 }
 0x22f   : > { %745 = dma.done.wait (!%p570_p1), %s463_s27, 256  }
 0x230   : > { %747 = vsyncadd (!%p570_p1), %s463_s27, 4294967040  ;;  %s19_s19 = sadd.s32 1, %s778_s19   ;;  %s1041_s28 = sld [smem:[#allocation8_spill]] }
 0x231   : > { %p16_p3 = scmp.ge.s32.totalorder %s19_s19, 6   ;;  %s1042_s12 = smov %s754_s13 }
 0x232   : > { %s1043_s13 = smov %s758_s14  ;;  %s1044_s14 = smov %s887_s6 }
 0x233   : > { %s1045_s15 = smov %s770_s17  ;;  %s1046_s16 = smov %s774_s18 }
 0x234   : > { %s1047_s17 = smov %s1050_s22  ;;  %18 = sbr.rel (!%p16_p3) target bundleno = 7 (0x7), region = 79 }
 0x236   : > { %s1048_s18 = smov %s1041_s28 }
 0x23b   :  { %468 = vsyncpa [#allocation3], 1 }
 0x23c   :  { %470 = vsyncpa [#allocation3 + $0x1], 1 }
 0x23d   :  { %471 = vsyncpa [#allocation4], 1 }
 0x23e   :  { %473 = vsyncpa [#allocation4 + $0x1], 1 }

</bundles_post_ra>
